<compile_context>
chip_gen: v7x
topology: tpu7x:2x2x1
jax: 0.10.0
libtpu: 0.0.40
codegen_flags: <defaults>
</compile_context>

<pallas_src>
import functools

import jax
import jax.numpy as jnp
import numpy as np
from jax.experimental import pallas as pl
from jax.experimental.pallas import tpu as pltpu


def _rbf_compose_kernel(invls2_ref, x1_ref, x2_ref, sum_ref, prod_ref, *, bf16_exp=False):
    """One (TM, TN) output tile; K components and ds features unrolled in-kernel.

    invls2_ref: (K, ds)     SMEM  -- 1 / lengthscale^2 per component / feature
    x1_ref:     (K, TM, ds) VMEM  -- active-dim slice of x1 rows for this tile
    x2_ref:     (K, ds, TN) VMEM  -- active-dim slice of x2 cols (m on lanes)
    sum_ref:    (TM, TN)          -- AdditiveKernel output tile
    prod_ref:   (TM, TN)          -- ProductKernel output tile
    """
    K, _, ds = x1_ref.shape

    ksum = None
    kprod = None
    for k in range(K):                       # K is tiny (2-4): static unroll
        x1k = x1_ref[k]                      # (TM, ds)
        x2k = x2_ref[k]                      # (ds, TN)
        d2 = None
        for f in range(ds):                  # ds is tiny (1-8): static unroll, pure VPU
            diff = x1k[:, f:f + 1] - x2k[f:f + 1, :]          # (TM, TN) broadcast diff
            term = invls2_ref[k, f] * (diff * diff)           # SMEM scalar * vreg
            d2 = term if d2 is None else d2 + term
        e_arg = -0.5 * d2
        if bf16_exp:
            # v6e / v7x: bf16 EUP exp (~2x transcendental throughput). Not for v5e.
            kmat = jnp.exp(e_arg.astype(jnp.bfloat16)).astype(jnp.float32)
        else:
            kmat = jnp.exp(e_arg)
        ksum = kmat if ksum is None else ksum + kmat          # AdditiveKernel.forward
        kprod = kmat if kprod is None else kprod * kmat       # ProductKernel.forward

    sum_ref[...] = ksum
    prod_ref[...] = kprod


def _round_up(x, mult):
    return ((x + mult - 1) // mult) * mult


def additive_and_product_rbf(x1, x2, active_dims, log_lengthscale, eps=1e-6,
                             bf16_exp=False):
    """Evaluate AdditiveKernel and ProductKernel of K RBF component kernels.

    x1: (n, d), x2: (m, d)
    active_dims: (K, ds) int32   -- active_dims of each component kernel
    log_lengthscale: (K, 1, ds)  -- base-Kernel parameter, one per component
    Returns (sum_K, prod_K), each (n, m) float32.
    """
    n, _ = x1.shape
    m = x2.shape[0]
    K, ds = active_dims.shape

    # Kernel.__call__ active_dims index-select (glue, plain JAX).
    x1_sel = jnp.transpose(x1[:, active_dims], (1, 0, 2)).astype(jnp.float32)   # (K, n, ds)
    x2_sel = jnp.transpose(x2[:, active_dims], (1, 2, 0)).astype(jnp.float32)   # (K, ds, m)

    # Kernel.lengthscale property: param_transform=exp, clamp(eps, 1e5).
    lengthscale = jnp.clip(jnp.exp(log_lengthscale), eps, 1e5)                  # (K, 1, ds)
    invls2 = (1.0 / (lengthscale * lengthscale)).astype(jnp.float32).reshape(K, ds)

    # Tile sizes: TM multiple of 8 (sublanes), TN multiple of 128 (lane-dense stores).
    # 256x512 f32 -> 0.5 MiB per output block; 2 outputs double-buffered + inputs
    # stays a few MiB, comfortably under v7x's 32 MiB scoped-VMEM default.
    TM = _round_up(n, 8) if n <= 256 else 256
    TN = _round_up(m, 128) if m <= 512 else 512
    n_pad = _round_up(n, TM)
    m_pad = _round_up(m, TN)
    if n_pad != n:
        x1_sel = jnp.pad(x1_sel, ((0, 0), (0, n_pad - n), (0, 0)))
    if m_pad != m:
        x2_sel = jnp.pad(x2_sel, ((0, 0), (0, 0), (0, m_pad - m)))

    grid = (n_pad // TM, m_pad // TN)

    out_shapes = (
        jax.ShapeDtypeStruct((n_pad, m_pad), jnp.float32),
        jax.ShapeDtypeStruct((n_pad, m_pad), jnp.float32),
    )

    grid_spec = pltpu.PrefetchScalarGridSpec(
        num_scalar_prefetch=0,
        grid=grid,
        in_specs=[
            pl.BlockSpec(memory_space=pltpu.MemorySpace.SMEM),         # 1/ls^2 scalars
            pl.BlockSpec((K, TM, ds), lambda i, j: (0, i, 0)),         # x1 slice (rows)
            pl.BlockSpec((K, ds, TN), lambda i, j: (0, 0, j)),         # x2 slice (m on lanes)
        ],
        out_specs=[
            pl.BlockSpec((TM, TN), lambda i, j: (i, j)),               # AdditiveKernel tile
            pl.BlockSpec((TM, TN), lambda i, j: (i, j)),               # ProductKernel tile
        ],
    )

    cost = pl.CostEstimate(
        flops=int(K * n_pad * m_pad * (4 * ds + 3)),
        transcendentals=int(K * n_pad * m_pad),
        bytes_accessed=int(4 * (2 * n_pad * m_pad + K * n_pad * ds + K * m_pad * ds)),
    )

    sum_k, prod_k = pl.pallas_call(
        functools.partial(_rbf_compose_kernel, bf16_exp=bf16_exp),
        out_shape=out_shapes,
        grid_spec=grid_spec,
        compiler_params=pltpu.CompilerParams(
            dimension_semantics=("parallel", "parallel"),   # both output axes shardable
        ),
        cost_estimate=cost,
    )(invls2, x1_sel, x2_sel)

    return sum_k[:n, :m], prod_k[:n, :m]


def _reference(x1, x2, active_dims, log_lengthscale, eps=1e-6):
    x1_sel = jnp.transpose(x1[:, active_dims], (1, 0, 2)).astype(jnp.float32)
    x2_sel = jnp.transpose(x2[:, active_dims], (1, 0, 2)).astype(jnp.float32)
    ls = jnp.clip(jnp.exp(log_lengthscale), eps, 1e5)
    x1s = x1_sel / ls
    x2s = x2_sel / ls
    diff = x1s[:, :, None, :] - x2s[:, None, :, :]
    d2 = jnp.sum(diff * diff, axis=-1)
    kmats = jnp.exp(-0.5 * d2)
    return jnp.sum(kmats, axis=0), jnp.prod(kmats, axis=0)


if __name__ == "__main__":
    key = jax.random.PRNGKey(0)
    k1, k2 = jax.random.split(key)

    # Non-batch mode, like the AdditiveKernel docstring example, with non-tile-aligned
    # n and m to exercise the padding path.
    n, m, d = 100, 160, 4
    K, ds = 2, 1

    x1 = jax.random.normal(k1, (n, d), dtype=jnp.float32)
    x2 = jax.random.normal(k2, (m, d), dtype=jnp.float32)

    # active_dims = [1] and [2], as in the AdditiveKernel docstring example.
    active_dims = jnp.array([[1], [2]], dtype=jnp.int32)

    # Deterministic base-Kernel parameter init: log_lengthscale ~ torch.zeros(batch, 1, ard_dims),
    # perturbed deterministically per component so lengthscales differ.
    log_lengthscale = jnp.array([0.0, 0.25], dtype=jnp.float32).reshape(K, 1, ds)

    fn = jax.jit(additive_and_product_rbf)
    add_k, prod_k = fn(x1, x2, active_dims, log_lengthscale)
    jax.block_until_ready((add_k, prod_k))

    add_ref, prod_ref = _reference(x1, x2, active_dims, log_lengthscale)
    np.testing.assert_allclose(np.asarray(add_k), np.asarray(add_ref), rtol=1e-5, atol=1e-5)
    np.testing.assert_allclose(np.asarray(prod_k), np.asarray(prod_ref), rtol=1e-5, atol=1e-5)

    # TODO(synk): diag=True and batch_dims=(0, 2) evaluation modes of Kernel.__call__
    # (LazyTensor indexing machinery) are not reproduced; only full-covar forward is.

    print("KERNEL_OK")
</pallas_src>

<mosaic_0001>
module attributes {stable_mosaic.version = 11 : i64} {
  func.func @_rbf_compose_kernel(%arg0: i32, %arg1: i32, %arg2: memref<2x1xf32, #tpu.memory_space<smem>>, %arg3: memref<2x104x1xf32, #tpu.memory_space<vmem>>, %arg4: memref<2x1x256xf32, #tpu.memory_space<vmem>>, %arg5: memref<104x256xf32, #tpu.memory_space<vmem>>, %arg6: memref<104x256xf32, #tpu.memory_space<vmem>>) attributes {dimension_semantics = [#tpu.dimension_semantics<parallel>, #tpu.dimension_semantics<parallel>], iteration_bounds = array<i64: 1, 1>, scalar_prefetch = 0 : i64, scratch_operands = 0 : i64, tpu.core_type = #tpu.core_type<tc>, window_params = [{transform_indices = @transform_0, window_bounds = array<i64: 2, 1>}, {transform_indices = @transform_1, window_bounds = array<i64: 2, 104, 1>}, {transform_indices = @transform_2, window_bounds = array<i64: 2, 1, 256>}, {transform_indices = @transform_3, window_bounds = array<i64: 104, 256>}, {transform_indices = @transform_4, window_bounds = array<i64: 104, 256>}]} {
    %c0 = arith.constant 0 : index
    %c0_0 = arith.constant 0 : index
    %c0_1 = arith.constant 0 : index
    %0 = vector.load %arg3[%c0, %c0_0, %c0_1] : memref<2x104x1xf32, #tpu.memory_space<vmem>>, vector<1x104x1xf32>
    %1 = vector.shape_cast %0 : vector<1x104x1xf32> to vector<104x1xf32>
    %c0_2 = arith.constant 0 : index
    %c0_3 = arith.constant 0 : index
    %c0_4 = arith.constant 0 : index
    %2 = vector.load %arg4[%c0_2, %c0_3, %c0_4] : memref<2x1x256xf32, #tpu.memory_space<vmem>>, vector<1x1x256xf32>
    %3 = vector.shape_cast %2 : vector<1x1x256xf32> to vector<1x256xf32>
    %4 = vector.broadcast %1 : vector<104x1xf32> to vector<104x256xf32>
    %5 = vector.broadcast %3 : vector<1x256xf32> to vector<104x256xf32>
    %6 = arith.subf %4, %5 : vector<104x256xf32>
    %c0_5 = arith.constant 0 : index
    %c0_6 = arith.constant 0 : index
    %7 = memref.load %arg2[%c0_5, %c0_6] : memref<2x1xf32, #tpu.memory_space<smem>>
    %8 = arith.mulf %6, %6 : vector<104x256xf32>
    %9 = vector.broadcast %7 : f32 to vector<104x256xf32>
    %10 = arith.mulf %9, %8 : vector<104x256xf32>
    %cst = arith.constant -5.000000e-01 : f32
    %11 = vector.broadcast %cst : f32 to vector<104x256xf32>
    %12 = arith.mulf %11, %10 : vector<104x256xf32>
    %13 = math.exp %12 : vector<104x256xf32>
    %c1 = arith.constant 1 : index
    %c0_7 = arith.constant 0 : index
    %c0_8 = arith.constant 0 : index
    %14 = vector.load %arg3[%c1, %c0_7, %c0_8] : memref<2x104x1xf32, #tpu.memory_space<vmem>>, vector<1x104x1xf32>
    %15 = vector.shape_cast %14 : vector<1x104x1xf32> to vector<104x1xf32>
    %c1_9 = arith.constant 1 : index
    %c0_10 = arith.constant 0 : index
    %c0_11 = arith.constant 0 : index
    %16 = vector.load %arg4[%c1_9, %c0_10, %c0_11] : memref<2x1x256xf32, #tpu.memory_space<vmem>>, vector<1x1x256xf32>
    %17 = vector.shape_cast %16 : vector<1x1x256xf32> to vector<1x256xf32>
    %18 = vector.broadcast %15 : vector<104x1xf32> to vector<104x256xf32>
    %19 = vector.broadcast %17 : vector<1x256xf32> to vector<104x256xf32>
    %20 = arith.subf %18, %19 : vector<104x256xf32>
    %c1_12 = arith.constant 1 : index
    %c0_13 = arith.constant 0 : index
    %21 = memref.load %arg2[%c1_12, %c0_13] : memref<2x1xf32, #tpu.memory_space<smem>>
    %22 = arith.mulf %20, %20 : vector<104x256xf32>
    %23 = vector.broadcast %21 : f32 to vector<104x256xf32>
    %24 = arith.mulf %23, %22 : vector<104x256xf32>
    %cst_14 = arith.constant -5.000000e-01 : f32
    %25 = vector.broadcast %cst_14 : f32 to vector<104x256xf32>
    %26 = arith.mulf %25, %24 : vector<104x256xf32>
    %27 = math.exp %26 : vector<104x256xf32>
    %28 = arith.addf %13, %27 : vector<104x256xf32>
    %29 = arith.mulf %13, %27 : vector<104x256xf32>
    %c0_15 = arith.constant 0 : index
    %c0_16 = arith.constant 0 : index
    %30 = vector.load %arg5[%c0_15, %c0_16] : memref<104x256xf32, #tpu.memory_space<vmem>>, vector<104x256xf32>
    tpu.vector_store %arg5[%c0_15, %c0_16], %28 {strides = array<i32>} : memref<104x256xf32, #tpu.memory_space<vmem>>, vector<104x256xf32>,
    %c0_17 = arith.constant 0 : index
    %c0_18 = arith.constant 0 : index
    %31 = vector.load %arg6[%c0_17, %c0_18] : memref<104x256xf32, #tpu.memory_space<vmem>>, vector<104x256xf32>
    tpu.vector_store %arg6[%c0_17, %c0_18], %29 {strides = array<i32>} : memref<104x256xf32, #tpu.memory_space<vmem>>, vector<104x256xf32>,
    return
  }
  func.func @transform_0(%arg0: i32, %arg1: i32) -> (i32, i32) {
    %c0_i32 = arith.constant 0 : i32
    %c0_i32_0 = arith.constant 0 : i32
    %c0_i32_1 = arith.constant 0 : i32
    return %c0_i32, %c0_i32_0 : i32, i32
  }
  func.func @transform_1(%arg0: i32, %arg1: i32) -> (i32, i32, i32) {
    %c0_i32 = arith.constant 0 : i32
    %c0_i32_0 = arith.constant 0 : i32
    %c0_i32_1 = arith.constant 0 : i32
    return %c0_i32, %arg0, %c0_i32_0 : i32, i32, i32
  }
  func.func @transform_2(%arg0: i32, %arg1: i32) -> (i32, i32, i32) {
    %c0_i32 = arith.constant 0 : i32
    %c0_i32_0 = arith.constant 0 : i32
    %c0_i32_1 = arith.constant 0 : i32
    return %c0_i32, %c0_i32_0, %arg1 : i32, i32, i32
  }
  func.func @transform_3(%arg0: i32, %arg1: i32) -> (i32, i32) {
    %c0_i32 = arith.constant 0 : i32
    return %arg0, %arg1 : i32, i32
  }
  func.func @transform_4(%arg0: i32, %arg1: i32) -> (i32, i32) {
    %c0_i32 = arith.constant 0 : i32
    return %arg0, %arg1 : i32, i32
  }
}

</mosaic_0001>

<bundles_post_ra>
// kernel: additive_and_product_rbf.1
= control target key start
LH: loop header
LB: loop body
LE: loop exit
PB: predicated region body
PF: predicated region fallthrough
CT: control target
= control target key end

     0   :  { %10 = vsyncpa [#allocation3], 0  ;;  %s1280_s0 = inlined_call_operand.vmem [shape: f32[2,1], index: 0, kind: input, shape index: {}]   ;;  %s1281_s1 = inlined_call_operand.vmem [shape: f32[2,104,1], index: 1, kind: input, shape index: {}]   ;;  %s1282_s2 = inlined_call_operand.vmem [shape: f32[2,1,256], index: 2, kind: input, shape index: {}]   ;;  %s1283_s3 = inlined_call_operand.vmem [shape: f32[104,256], index: 3, kind: output, shape index: {0}]   ;;  %s1284_s4 = inlined_call_operand.vmem [shape: f32[104,256], index: 4, kind: output, shape index: {1}]  }
   0x1   :  { %s17_s17 = sshll.u32 %s1280_s0, 4  ;;  %s18_s17 = int_to_ptr.vmem [resolvable:$true] %s17_s17 }
   0x2   :  { %s763_s18 = scalar_lea.vmem %s18_s17, 32  ;;  %p768_p1 = scmp.lt.s32.totalorder %s18_s17, %s18_s17 }
   0x3   :  { %p764_p0 = scmp.ne.s32.totalorder %s18_s17, %s763_s18  ;;  %p769_p2 = scmp.lt.s32.totalorder %s763_s18, %s763_s18 }
   0x5   :  { %p770_p3 = por %p769_p2, %p768_p1 }
   0x7   :  { %p771_p4 = pnand %p770_p3, %p764_p0 }
   0x9   :  { %774 = shalt.err (!%p771_p4)
}
   0xa   :  { %s777_s19 = smov [#allocation2]  }
   0xb   :  { %20 = dma.vmem_to_smem %s18_s17, 32, %s777_s19, [#allocation3]  }
   0xc   :  { %775 = dma.done.wait [#allocation3], 32  }
   0xd   :  { %776 = vsyncadd [#allocation3], 4294967264 }
   0xe   :  { %28 = sfence }
   0xf   :  { %v31_v0 = vld [vmem:[%s1281_s1 + $0x10] sm:$0xff]  ;;  %v29_v1 = vld [vmem:[%s1281_s1] sm:$0xff]  ;;  %v778_v2 = vmov 0   ;;  %v32_v3 = vld [vmem:[%s1281_s1 + $0x18] sm:$0xff]  ;;  %v109_v27 = vlaneseq  ;;  %s145_s20 = sld [smem:[#allocation2]] }
  0x10   :  { %658 = vset.pattern.permute.xlu1 %v778_v2  ;;  %657 = vset.pattern.permute.xlu0 %v778_v2  ;;  %v30_v4 = vld [vmem:[%s1281_s1 + $0x8] sm:$0xff]  ;;  %v33_v6 = vld [vmem:[%s1281_s1 + $0x20] sm:$0xff]  ;;  %v36_v7 = vld [vmem:[%s1281_s1 + $0x38] sm:$0xff] }
  0x11   :  { %55 = vperm.xlu1 %658, %v31_v0   ;;  %45 = vperm.xlu0 %657, %v29_v1   ;;  %v34_v5 = vld [vmem:[%s1281_s1 + $0x28] sm:$0xff]  ;;  %v35_v8 = vld [vmem:[%s1281_s1 + $0x30] sm:$0xff]  ;;  %v37_v10 = vld [vmem:[%s1281_s1 + $0x40] sm:$0xff]  ;;  %v885_v28 = vshrl.u32 %v109_v27, 7 }
  0x12   :  { %v38_v9 = vld [vmem:[%s1281_s1 + $0x48] sm:$0xff]  ;;  %v40_v11 = vld [vmem:[%s1281_s1 + $0x58] sm:$0xff]  ;;  %v39_v12 = vld [vmem:[%s1281_s1 + $0x50] sm:$0xff] }
  0x13   :  { %v640_v13 = vld [vmem:[%s1281_s1 + $0x68] sm:$0xff]  ;;  %v41_v14 = vld [vmem:[%s1281_s1 + $0x60] sm:$0xff]  ;;  %v642_v15 = vld [vmem:[%s1281_s1 + $0x78] sm:$0xff]  ;;  %v111_v29 = vsub.s32 0, %v885_v28  ;;  %v115_v30 = vsub.s32 1, %v885_v28 }
  0x14   :  { %v641_v16 = vld [vmem:[%s1281_s1 + $0x70] sm:$0xff]  ;;  %v644_v17 = vld [vmem:[%s1281_s1 + $0x88] sm:$0xff]  ;;  %v643_v18 = vld [vmem:[%s1281_s1 + $0x80] sm:$0xff] }
  0x15   :  { %60 = vperm.xlu1 %658, %v32_v3   ;;  %50 = vperm.xlu0 %657, %v30_v4   ;;  %v646_v19 = vld [vmem:[%s1281_s1 + $0x98] sm:$0xff]  ;;  %v645_v20 = vld [vmem:[%s1281_s1 + $0x90] sm:$0xff]  ;;  %v648_v21 = vld [vmem:[%s1281_s1 + $0xa8] sm:$0xff]  ;;  %v907_v41 = vstv %s145_s20 }
  0x16   :  { %v647_v22 = vld [vmem:[%s1281_s1 + $0xa0] sm:$0xff]  ;;  %v650_v23 = vld [vmem:[%s1281_s1 + $0xb8] sm:$0xff]  ;;  %v649_v24 = vld [vmem:[%s1281_s1 + $0xb0] sm:$0xff] }
  0x17   :  { %v652_v25 = vld [vmem:[%s1281_s1 + $0xc8] sm:$0xff]  ;;  %v651_v26 = vld [vmem:[%s1281_s1 + $0xc0] sm:$0xff] }
  0x18   :  { %v42_v31 = vld [vmem:[%s1282_s2] sm:$0x3]  ;;  %v905_v40 = vld [vmem:[%s1282_s2 + $0x2] sm:$0x3]  ;;  %s952_s2 = sld [smem:[#allocation2 + $0x80]] }
  0x19   :  { %70 = vperm.xlu1 %658, %v34_v5   ;;  %65 = vperm.xlu0 %657, %v33_v6   ;;  %v892_v32 = vrot.slane %v42_v31, %v111_v29  ;;  %v896_v33 = vrot.slane %v42_v31, %v115_v30  ;;  %v910_v48 = vrot.slane %v905_v40, %v111_v29 }
  0x1d   :  { %80 = vperm.xlu1 %658, %v36_v7   ;;  %75 = vperm.xlu0 %657, %v35_v8  }
  0x21   :  { %90 = vperm.xlu1 %658, %v38_v9   ;;  %85 = vperm.xlu0 %657, %v37_v10  }
  0x25   :  { %100 = vperm.xlu1 %658, %v40_v11   ;;  %95 = vperm.xlu0 %657, %v39_v12  }
  0x29   :  { %295 = vperm.xlu1 %658, %v640_v13   ;;  %105 = vperm.xlu0 %657, %v41_v14  }
  0x2d   :  { %305 = vperm.xlu1 %658, %v642_v15   ;;  %300 = vperm.xlu0 %657, %v641_v16  }
  0x31   :  { %315 = vperm.xlu1 %658, %v644_v17   ;;  %310 = vperm.xlu0 %657, %v643_v18  }
  0x35   :  { %325 = vperm.xlu1 %658, %v646_v19   ;;  %320 = vperm.xlu0 %657, %v645_v20  }
  0x39   :  { %335 = vperm.xlu1 %658, %v648_v21   ;;  %330 = vperm.xlu0 %657, %v647_v22  }
  0x3d   :  { %345 = vperm.xlu1 %658, %v650_v23   ;;  %340 = vperm.xlu0 %657, %v649_v24  }
  0x41   :  { %355 = vperm.xlu1 %658, %v652_v25   ;;  %350 = vperm.xlu0 %657, %v651_v26  }
  0x90   :  { %v56_v34 = vpop.permute.xlu1 %55  ;;  %v46_v35 = vpop.permute.xlu0 %45 }
  0x91   :  { %v123_v36 = vsub.f32 %v56_v34, %v892_v32  ;;  %v124_v37 = vsub.f32 %v56_v34, %v896_v33  ;;  %v119_v38 = vsub.f32 %v46_v35, %v892_v32  ;;  %v120_v39 = vsub.f32 %v46_v35, %v896_v33 }
  0x93   :  { %v150_v42 = vmul.f32 %v123_v36, %v123_v36  ;;  %v151_v43 = vmul.f32 %v124_v37, %v124_v37  ;;  %v146_v44 = vmul.f32 %v119_v38, %v119_v38  ;;  %v147_v45 = vmul.f32 %v120_v39, %v120_v39 }
  0x94   :  { %v61_v46 = vpop.permute.xlu1 %60  ;;  %v51_v47 = vpop.permute.xlu0 %50 }
  0x95   :  { %v177_v49 = vmul.f32 %v907_v41, %v150_v42  ;;  %v178_v50 = vmul.f32 %v907_v41, %v151_v43  ;;  %v173_v51 = vmul.f32 %v907_v41, %v146_v44  ;;  %v174_v52 = vmul.f32 %v907_v41, %v147_v45 }
  0x96   :  { %v125_v53 = vsub.f32 %v61_v46, %v892_v32  ;;  %v126_v54 = vsub.f32 %v61_v46, %v896_v33  ;;  %v121_v55 = vsub.f32 %v51_v47, %v892_v32  ;;  %v122_v56 = vsub.f32 %v51_v47, %v896_v33 }
  0x97   :  { %v203_v57 = vmul.f32 -0.5, %v177_v49  ;;  %v204_v58 = vmul.f32 -0.5, %v178_v50  ;;  %v199_v59 = vmul.f32 -0.5, %v173_v51  ;;  %v200_v60 = vmul.f32 -0.5, %v174_v52 }
  0x98   :  { %v152_v61 = vmul.f32 %v125_v53, %v125_v53  ;;  %v153_v62 = vmul.f32 %v126_v54, %v126_v54  ;;  %v148_v63 = vmul.f32 %v121_v55, %v121_v55  ;;  %v149_v0 = vmul.f32 %v122_v56, %v122_v56  ;;  %v71_v1 = vpop.permute.xlu1 %70  ;;  %v66_v6 = vpop.permute.xlu0 %65 }
  0x99   :  { %v233_v2 = vmul.f32 1.442695, %v203_v57  ;;  %v235_v3 = vmul.f32 1.442695, %v204_v58  ;;  %v225_v4 = vmul.f32 1.442695, %v199_v59  ;;  %v129_v5 = vsub.f32 %v71_v1, %v892_v32 }
  0x9a   :  { %v227_v7 = vmul.f32 1.442695, %v200_v60  ;;  %v179_v8 = vmul.f32 %v907_v41, %v152_v61  ;;  %v180_v9 = vmul.f32 %v907_v41, %v153_v62  ;;  %v175_v10 = vmul.f32 %v907_v41, %v148_v63 }
  0x9b   :  { %659 = vpow2.f32 %v233_v2  ;;  %v176_v11 = vmul.f32 %v907_v41, %v149_v0  ;;  %v130_v12 = vsub.f32 %v71_v1, %v896_v33  ;;  %v156_v13 = vmul.f32 %v129_v5, %v129_v5 }
  0x9c   :  { %661 = vpow2.f32 %v235_v3  ;;  %v205_v14 = vmul.f32 -0.5, %v179_v8  ;;  %v206_v15 = vmul.f32 -0.5, %v180_v9  ;;  %v201_v16 = vmul.f32 -0.5, %v175_v10  ;;  %v81_v20 = vpop.permute.xlu1 %80  ;;  %v76_v29 = vpop.permute.xlu0 %75 }
  0x9d   :  { %663 = vpow2.f32 %v225_v4  ;;  %v202_v17 = vmul.f32 -0.5, %v176_v11  ;;  %v157_v18 = vmul.f32 %v130_v12, %v130_v12  ;;  %v183_v19 = vmul.f32 %v907_v41, %v156_v13 }
  0x9e   :  { %665 = vpow2.f32 %v227_v7  ;;  %v237_v21 = vmul.f32 1.442695, %v205_v14  ;;  %v239_v22 = vmul.f32 1.442695, %v206_v15  ;;  %v229_v23 = vmul.f32 1.442695, %v201_v16 }
  0x9f   :  { %v231_v24 = vmul.f32 1.442695, %v202_v17  ;;  %v184_v25 = vmul.f32 %v907_v41, %v157_v18  ;;  %v209_v26 = vmul.f32 -0.5, %v183_v19  ;;  %v127_v27 = vsub.f32 %v66_v6, %v892_v32 }
  0xa0   :  { %667 = vpow2.f32 %v237_v21  ;;  %v128_v31 = vsub.f32 %v66_v6, %v896_v33  ;;  %v133_v34 = vsub.f32 %v81_v20, %v892_v32  ;;  %v134_v35 = vsub.f32 %v81_v20, %v896_v33  ;;  %v91_v46 = vpop.permute.xlu1 %90  ;;  %v86_v57 = vpop.permute.xlu0 %85 }
  0xa1   :  { %669 = vpow2.f32 %v239_v22  ;;  %v210_v36 = vmul.f32 -0.5, %v184_v25  ;;  %v245_v37 = vmul.f32 1.442695, %v209_v26  ;;  %v154_v38 = vmul.f32 %v127_v27, %v127_v27 }
  0xa2   :  { %671 = vpow2.f32 %v229_v23  ;;  %v155_v39 = vmul.f32 %v128_v31, %v128_v31  ;;  %v160_v42 = vmul.f32 %v133_v34, %v133_v34  ;;  %v161_v43 = vmul.f32 %v134_v35, %v134_v35 }
  0xa3   :  { %673 = vpow2.f32 %v231_v24  ;;  %v181_v44 = vmul.f32 %v907_v41, %v154_v38  ;;  %v131_v45 = vsub.f32 %v76_v29, %v892_v32  ;;  %v937_v47 = vrot.slane %v905_v40, %v115_v30 }
  0xa4   :  { %v247_v49 = vmul.f32 1.442695, %v210_v36  ;;  %v182_v50 = vmul.f32 %v907_v41, %v155_v39  ;;  %v187_v51 = vmul.f32 %v907_v41, %v160_v42  ;;  %v188_v52 = vmul.f32 %v907_v41, %v161_v43  ;;  %v101_v9 = vpop.permute.xlu1 %100  ;;  %v96_v18 = vpop.permute.xlu0 %95 }
  0xa5   :  { %v942_v53 = vpop.eup %659  ;;  %675 = vpow2.f32 %v245_v37  ;;  %v207_v54 = vmul.f32 -0.5, %v181_v44  ;;  %v132_v55 = vsub.f32 %v76_v29, %v896_v33  ;;  %v158_v56 = vmul.f32 %v131_v45, %v131_v45 }
  0xa6   :  { %v945_v58 = vpop.eup %661  ;;  %v208_v28 = vmul.f32 -0.5, %v182_v50  ;;  %v213_v30 = vmul.f32 -0.5, %v187_v51  ;;  %v214_v40 = vmul.f32 -0.5, %v188_v52  ;;  %v137_v59 = vsub.f32 %v91_v46, %v892_v32 }
  0xa7   :  { %v948_v60 = vpop.eup %663  ;;  %v241_v61 = vmul.f32 1.442695, %v207_v54  ;;  %v159_v62 = vmul.f32 %v132_v55, %v132_v55  ;;  %v185_v63 = vmul.f32 %v907_v41, %v158_v56  ;;  %v138_v0 = vsub.f32 %v91_v46, %v896_v33 }
  0xa8   :  { %v954_v1 = vpop.eup %665  ;;  %677 = vpow2.f32 %v247_v49  ;;  %v243_v2 = vmul.f32 1.442695, %v208_v28  ;;  %v253_v3 = vmul.f32 1.442695, %v213_v30  ;;  %v164_v4 = vmul.f32 %v137_v59, %v137_v59  ;;  %v296_v39 = vpop.permute.xlu1 %295 }
  0xa9   :  { %v255_v5 = vmul.f32 1.442695, %v214_v40  ;;  %v186_v6 = vmul.f32 %v907_v41, %v159_v62  ;;  %v211_v7 = vmul.f32 -0.5, %v185_v63  ;;  %v165_v8 = vmul.f32 %v138_v0, %v138_v0  ;;  %v106_v51 = vpop.permute.xlu0 %105 }
  0xaa   :  { %v957_v10 = vpop.eup %667  ;;  %679 = vpow2.f32 %v241_v61  ;;  %v191_v11 = vmul.f32 %v907_v41, %v164_v4  ;;  %v135_v12 = vsub.f32 %v86_v57, %v892_v32  ;;  %v136_v13 = vsub.f32 %v86_v57, %v896_v33 }
  0xab   :  { %v962_v14 = vpop.eup %669  ;;  %681 = vpow2.f32 %v243_v2  ;;  %v212_v15 = vmul.f32 -0.5, %v186_v6  ;;  %v249_v16 = vmul.f32 1.442695, %v211_v7  ;;  %v192_v17 = vmul.f32 %v907_v41, %v165_v8 }
  0xac   :  { %v965_v19 = vpop.eup %671  ;;  %683 = vpow2.f32 %v253_v3  ;;  %v217_v20 = vmul.f32 -0.5, %v191_v11  ;;  %v162_v21 = vmul.f32 %v135_v12, %v135_v12  ;;  %v163_v22 = vmul.f32 %v136_v13, %v136_v13 }
  0xad   :  { %v967_v23 = vpop.eup %673  ;;  %685 = vpow2.f32 %v255_v5  ;;  %v251_v24 = vmul.f32 1.442695, %v212_v15  ;;  %v218_v25 = vmul.f32 -0.5, %v192_v17  ;;  %v141_v26 = vsub.f32 %v101_v9, %v892_v32  ;;  %v306_v5 = vpop.permute.xlu1 %305 }
  0xae   :  { %v261_v27 = vmul.f32 1.442695, %v217_v20  ;;  %v189_v29 = vmul.f32 %v907_v41, %v162_v21  ;;  %v190_v31 = vmul.f32 %v907_v41, %v163_v22  ;;  %v142_v34 = vsub.f32 %v101_v9, %v896_v33 }
  0xaf   :  { %v973_v35 = vpop.eup %675  ;;  %687 = vpow2.f32 %v249_v16  ;;  %v168_v36 = vmul.f32 %v141_v26, %v141_v26  ;;  %v139_v37 = vsub.f32 %v96_v18, %v892_v32  ;;  %v977_v38 = vstv %s952_s2 }
  0xb0   :  { %689 = vpow2.f32 %v251_v24  ;;  %v263_v42 = vmul.f32 1.442695, %v218_v25  ;;  %v215_v43 = vmul.f32 -0.5, %v189_v29  ;;  %v216_v44 = vmul.f32 -0.5, %v190_v31 }
  0xb1   :  { %v169_v45 = vmul.f32 %v142_v34, %v142_v34  ;;  %v195_v46 = vmul.f32 %v907_v41, %v168_v36  ;;  %v140_v49 = vsub.f32 %v96_v18, %v896_v33  ;;  %v166_v50 = vmul.f32 %v139_v37, %v139_v37  ;;  %v301_v18 = vpop.permute.xlu0 %300  ;;  %v316_v37 = vpop.permute.xlu1 %315 }
  0xb2   :  { %v981_v52 = vpop.eup %677  ;;  %691 = vpow2.f32 %v261_v27  ;;  %v257_v54 = vmul.f32 1.442695, %v215_v43  ;;  %v259_v55 = vmul.f32 1.442695, %v216_v44  ;;  %v369_v56 = vsub.f32 %v296_v39, %v910_v48 }
  0xb3   :  { %v221_v57 = vmul.f32 -0.5, %v195_v46  ;;  %v167_v28 = vmul.f32 %v140_v49, %v140_v49  ;;  %v193_v30 = vmul.f32 %v907_v41, %v166_v50  ;;  %v370_v40 = vsub.f32 %v296_v39, %v937_v47 }
  0xb4   :  { %v986_v59 = vpop.eup %679  ;;  %693 = vpow2.f32 %v263_v42  ;;  %v396_v61 = vmul.f32 %v369_v56, %v369_v56  ;;  %v143_v62 = vsub.f32 %v106_v51, %v892_v32  ;;  %v196_v0 = vmul.f32 %v907_v41, %v169_v45 }
  0xb5   :  { %v989_v63 = vpop.eup %681  ;;  %v269_v2 = vmul.f32 1.442695, %v221_v57  ;;  %v194_v3 = vmul.f32 %v907_v41, %v167_v28  ;;  %v219_v4 = vmul.f32 -0.5, %v193_v30  ;;  %695 = vpow2.f32 %v257_v54  ;;  %v311_v56 = vpop.permute.xlu0 %310 }
  0xb6   :  { %v993_v6 = vpop.eup %683  ;;  %v397_v7 = vmul.f32 %v370_v40, %v370_v40  ;;  %v423_v8 = vmul.f32 %v977_v38, %v396_v61  ;;  %v144_v9 = vsub.f32 %v106_v51, %v896_v33  ;;  %697 = vpow2.f32 %v259_v55 }
  0xb7   :  { %v997_v11 = vpop.eup %685  ;;  %v220_v32 = vmul.f32 -0.5, %v194_v3  ;;  %v265_v12 = vmul.f32 1.442695, %v219_v4  ;;  %v170_v13 = vmul.f32 %v143_v62, %v143_v62  ;;  %699 = vpow2.f32 %v269_v2 }
  0xb8   :  { %v424_v15 = vmul.f32 %v977_v38, %v397_v7  ;;  %v449_v16 = vmul.f32 -0.5, %v423_v8  ;;  %v171_v17 = vmul.f32 %v144_v9, %v144_v9  ;;  %v373_v33 = vsub.f32 %v306_v5, %v910_v48 }
  0xb9   :  { %v1000_v20 = vpop.eup %687  ;;  %701 = vpow2.f32 %v265_v12  ;;  %v267_v21 = vmul.f32 1.442695, %v220_v32  ;;  %v197_v22 = vmul.f32 %v907_v41, %v170_v13  ;;  %v374_v29 = vsub.f32 %v306_v5, %v937_v47 }
  0xba   :  { %v1004_v24 = vpop.eup %689  ;;  %v450_v25 = vmul.f32 -0.5, %v424_v15  ;;  %v475_v26 = vmul.f32 1.442695, %v449_v16  ;;  %v198_v27 = vmul.f32 %v907_v41, %v171_v17  ;;  %v400_v34 = vmul.f32 %v373_v33, %v373_v33  ;;  %v326_v16 = vpop.permute.xlu1 %325 }
  0xbb   :  { %703 = vpow2.f32 %v267_v21  ;;  %v223_v31 = vmul.f32 -0.5, %v197_v22  ;;  %v371_v36 = vsub.f32 %v301_v18, %v910_v48  ;;  %v401_v44 = vmul.f32 %v374_v29, %v374_v29 }
  0xbc   :  { %v1009_v39 = vpop.eup %691  ;;  %705 = vpow2.f32 %v475_v26  ;;  %v477_v42 = vmul.f32 1.442695, %v450_v25  ;;  %v224_v43 = vmul.f32 -0.5, %v198_v27  ;;  %v427_v46 = vmul.f32 %v977_v38, %v400_v34  ;;  %v321_v27 = vpop.permute.xlu0 %320 }
  0xbd   :  { %v273_v45 = vmul.f32 1.442695, %v223_v31  ;;  %v372_v49 = vsub.f32 %v301_v18, %v937_v47  ;;  %v398_v41 = vmul.f32 %v371_v36, %v371_v36  ;;  %v1015_v51 = vmul.f32 -0.5, %v196_v0 }
  0xbe   :  { %v1013_v50 = vpop.eup %693  ;;  %707 = vpow2.f32 %v477_v42  ;;  %v428_v54 = vmul.f32 %v977_v38, %v401_v44  ;;  %v377_v55 = vsub.f32 %v316_v37, %v910_v48  ;;  %v1019_v57 = vmul.f32 1.442695, %v224_v43 }
  0xbf   :  { %v453_v28 = vmul.f32 -0.5, %v427_v46  ;;  %v399_v30 = vmul.f32 %v372_v49, %v372_v49  ;;  %v425_v40 = vmul.f32 %v977_v38, %v398_v41  ;;  %v1022_v61 = vpop.eup %695  ;;  %709 = vpow2.f32 %v273_v45 }
  0xc0   :  { %v454_v62 = vmul.f32 -0.5, %v428_v54  ;;  %v378_v2 = vsub.f32 %v316_v37, %v937_v47  ;;  %v404_v0 = vmul.f32 %v377_v55, %v377_v55  ;;  %v1025_v3 = vpop.eup %697  ;;  %v375_v8 = vsub.f32 %v311_v56, %v910_v48 }
  0xc1   :  { %v483_v4 = vmul.f32 1.442695, %v453_v28  ;;  %v426_v5 = vmul.f32 %v977_v38, %v399_v30  ;;  %v451_v7 = vmul.f32 -0.5, %v425_v40  ;;  %v1029_v9 = vpop.eup %699  ;;  %v376_v15 = vsub.f32 %v311_v56, %v937_v47  ;;  %v336_v30 = vpop.permute.xlu1 %335 }
  0xc2   :  { %v485_v32 = vmul.f32 1.442695, %v454_v62  ;;  %v405_v12 = vmul.f32 %v378_v2, %v378_v2  ;;  %v431_v13 = vmul.f32 %v977_v38, %v404_v0  ;;  %v402_v22 = vmul.f32 %v375_v8, %v375_v8  ;;  %v331_v8 = vpop.permute.xlu0 %330 }
  0xc3   :  { %v1033_v17 = vpop.eup %701  ;;  %711 = vpow2.f32 %v483_v4  ;;  %v452_v18 = vmul.f32 -0.5, %v426_v5  ;;  %v479_v21 = vmul.f32 1.442695, %v451_v7  ;;  %v403_v26 = vmul.f32 %v376_v15, %v376_v15 }
  0xc4   :  { %713 = vpow2.f32 %v485_v32  ;;  %v432_v33 = vmul.f32 %v977_v38, %v405_v12  ;;  %v457_v25 = vmul.f32 -0.5, %v431_v13  ;;  %v429_v34 = vmul.f32 %v977_v38, %v402_v22 }
  0xc5   :  { %v1036_v29 = vpop.eup %703  ;;  %715 = vpow2.f32 %v479_v21  ;;  %v481_v31 = vmul.f32 1.442695, %v452_v18  ;;  %v381_v36 = vsub.f32 %v326_v16, %v910_v48  ;;  %v430_v44 = vmul.f32 %v977_v38, %v403_v26 }
  0xc6   :  { %v706_v37 = vpop.eup %705  ;;  %v458_v42 = vmul.f32 -0.5, %v432_v33  ;;  %v491_v43 = vmul.f32 1.442695, %v457_v25  ;;  %v382_v45 = vsub.f32 %v326_v16, %v937_v47  ;;  %v455_v41 = vmul.f32 -0.5, %v429_v34 }
  0xc7   :  { %v527_v46 = vadd.f32 %v706_v37, %v948_v60  ;;  %v553_v49 = vmul.f32 %v706_v37, %v948_v60  ;;  %717 = vpow2.f32 %v481_v31  ;;  %v456_v56 = vmul.f32 -0.5, %v430_v44 }
  0xc8   :  { %v708_v54 = vpop.eup %707  ;;  %719 = vpow2.f32 %v491_v43  ;;  %v493_v55 = vmul.f32 1.442695, %v458_v42  ;;  %v408_v28 = vmul.f32 %v381_v36, %v381_v36  ;;  %v487_v60 = vmul.f32 1.442695, %v455_v41 }
  0xc9   :  { %v528_v40 = vadd.f32 %v708_v54, %v954_v1  ;;  %v554_v62 = vmul.f32 %v708_v54, %v954_v1  ;;  %579 = vst [vmem:[%s1283_s3] sm:$0xff] %v527_v46  ;;  %605 = vst [vmem:[%s1284_s4] sm:$0xff] %v553_v49  ;;  %v409_v2 = vmul.f32 %v382_v45, %v382_v45  ;;  %v1052_v0 = vpop.eup %709  ;;  %v489_v4 = vmul.f32 1.442695, %v456_v56  ;;  %v346_v56 = vpop.permute.xlu1 %345 }
  0xca   :  { %721 = vpow2.f32 %v493_v55  ;;  %v435_v5 = vmul.f32 %v977_v38, %v408_v28  ;;  %v379_v7 = vsub.f32 %v321_v27, %v910_v48  ;;  %v380_v32 = vsub.f32 %v321_v27, %v937_v47 }
  0xcb   :  { %580 = vst [vmem:[%s1283_s3 + $0x8] sm:$0xff] %v528_v40  ;;  %606 = vst [vmem:[%s1284_s4 + $0x8] sm:$0xff] %v554_v62  ;;  %723 = vpow2.f32 %v487_v60  ;;  %v436_v1 = vmul.f32 %v977_v38, %v409_v2  ;;  %v385_v12 = vsub.f32 %v336_v30, %v910_v48  ;;  %v386_v16 = vsub.f32 %v336_v30, %v937_v47 }
  0xcc   :  { %725 = vpow2.f32 %v489_v4  ;;  %v461_v13 = vmul.f32 -0.5, %v435_v5  ;;  %v406_v15 = vmul.f32 %v379_v7, %v379_v7  ;;  %v407_v22 = vmul.f32 %v380_v32, %v380_v32 }
  0xcd   :  { %v712_v18 = vpop.eup %711  ;;  %v462_v21 = vmul.f32 -0.5, %v436_v1  ;;  %v412_v33 = vmul.f32 %v385_v12, %v385_v12  ;;  %v383_v25 = vsub.f32 %v331_v8, %v910_v48  ;;  %v413_v54 = vmul.f32 %v386_v16, %v386_v16 }
  0xce   :  { %v714_v26 = vpop.eup %713  ;;  %v531_v31 = vadd.f32 %v712_v18, %v942_v53  ;;  %v557_v34 = vmul.f32 %v712_v18, %v942_v53  ;;  %v499_v36 = vmul.f32 1.442695, %v461_v13  ;;  %v433_v27 = vmul.f32 %v977_v38, %v406_v15  ;;  %v341_v15 = vpop.permute.xlu0 %340 }
  0xcf   :  { %v716_v37 = vpop.eup %715  ;;  %v532_v42 = vadd.f32 %v714_v26, %v945_v58  ;;  %v558_v43 = vmul.f32 %v714_v26, %v945_v58  ;;  %v501_v44 = vmul.f32 1.442695, %v462_v21  ;;  %v434_v45 = vmul.f32 %v977_v38, %v407_v22 }
  0xd0   :  { %583 = vst [vmem:[%s1283_s3 + $0x20] sm:$0xff] %v531_v31  ;;  %609 = vst [vmem:[%s1284_s4 + $0x20] sm:$0xff] %v557_v34  ;;  %v529_v53 = vadd.f32 %v716_v37, %v965_v19  ;;  %v555_v46 = vmul.f32 %v716_v37, %v965_v19  ;;  %727 = vpow2.f32 %v499_v36  ;;  %v459_v49 = vmul.f32 -0.5, %v433_v27  ;;  %v356_v34 = vpop.permute.xlu1 %355 }
  0xd1   :  { %v718_v41 = vpop.eup %717  ;;  %584 = vst [vmem:[%s1283_s3 + $0x28] sm:$0xff] %v532_v42  ;;  %610 = vst [vmem:[%s1284_s4 + $0x28] sm:$0xff] %v558_v43  ;;  %729 = vpow2.f32 %v501_v44  ;;  %v460_v58 = vmul.f32 -0.5, %v434_v45  ;;  %v439_v55 = vmul.f32 %v977_v38, %v412_v33  ;;  %v384_v62 = vsub.f32 %v331_v8, %v937_v47 }
  0xd2   :  { %v720_v28 = vpop.eup %719  ;;  %v530_v19 = vadd.f32 %v718_v41, %v967_v23  ;;  %v556_v30 = vmul.f32 %v718_v41, %v967_v23  ;;  %581 = vst [vmem:[%s1283_s3 + $0x10] sm:$0xff] %v529_v53  ;;  %607 = vst [vmem:[%s1284_s4 + $0x10] sm:$0xff] %v555_v46  ;;  %v495_v40 = vmul.f32 1.442695, %v459_v49  ;;  %v440_v5 = vmul.f32 %v977_v38, %v413_v54 }
  0xd3   :  { %v535_v60 = vadd.f32 %v720_v28, %v986_v59  ;;  %v561_v2 = vmul.f32 %v720_v28, %v986_v59  ;;  %v497_v4 = vmul.f32 1.442695, %v460_v58  ;;  %v465_v23 = vmul.f32 -0.5, %v439_v55 }
  0xd4   :  { %v722_v7 = vpop.eup %721  ;;  %582 = vst [vmem:[%s1283_s3 + $0x18] sm:$0xff] %v530_v19  ;;  %608 = vst [vmem:[%s1284_s4 + $0x18] sm:$0xff] %v556_v30  ;;  %731 = vpow2.f32 %v495_v40  ;;  %v410_v1 = vmul.f32 %v383_v25, %v383_v25  ;;  %v411_v8 = vmul.f32 %v384_v62, %v384_v62  ;;  %v466_v13 = vmul.f32 -0.5, %v440_v5 }
  0xd5   :  { %v724_v32 = vpop.eup %723  ;;  %v536_v12 = vadd.f32 %v722_v7, %v989_v63  ;;  %v562_v59 = vmul.f32 %v722_v7, %v989_v63  ;;  %587 = vst [vmem:[%s1283_s3 + $0x40] sm:$0xff] %v535_v60  ;;  %613 = vst [vmem:[%s1284_s4 + $0x40] sm:$0xff] %v561_v2  ;;  %733 = vpow2.f32 %v497_v4  ;;  %v507_v22 = vmul.f32 1.442695, %v465_v23 }
  0xd6   :  { %v726_v16 = vpop.eup %725  ;;  %v533_v18 = vadd.f32 %v724_v32, %v957_v10  ;;  %v559_v21 = vmul.f32 %v724_v32, %v957_v10  ;;  %v437_v33 = vmul.f32 %v977_v38, %v410_v1  ;;  %v509_v26 = vmul.f32 1.442695, %v466_v13 }
  0xd7   :  { %588 = vst [vmem:[%s1283_s3 + $0x48] sm:$0xff] %v536_v12  ;;  %614 = vst [vmem:[%s1284_s4 + $0x48] sm:$0xff] %v562_v59  ;;  %v534_v63 = vadd.f32 %v726_v16, %v962_v14  ;;  %v560_v25 = vmul.f32 %v726_v16, %v962_v14  ;;  %v438_v31 = vmul.f32 %v977_v38, %v411_v8  ;;  %735 = vpow2.f32 %v507_v22 }
  0xd8   :  { %585 = vst [vmem:[%s1283_s3 + $0x30] sm:$0xff] %v533_v18  ;;  %611 = vst [vmem:[%s1284_s4 + $0x30] sm:$0xff] %v559_v21  ;;  %v463_v10 = vmul.f32 -0.5, %v437_v33  ;;  %v389_v36 = vsub.f32 %v346_v56, %v910_v48  ;;  %v390_v27 = vsub.f32 %v346_v56, %v937_v47  ;;  %737 = vpow2.f32 %v509_v26  ;;  %v351_v56 = vpop.permute.xlu0 %350 }
  0xd9   :  { %586 = vst [vmem:[%s1283_s3 + $0x38] sm:$0xff] %v534_v63  ;;  %612 = vst [vmem:[%s1284_s4 + $0x38] sm:$0xff] %v560_v25  ;;  %v464_v14 = vmul.f32 -0.5, %v438_v31  ;;  %v387_v37 = vsub.f32 %v341_v15, %v910_v48  ;;  %v388_v42 = vsub.f32 %v341_v15, %v937_v47  ;;  %v393_v46 = vsub.f32 %v356_v34, %v910_v48 }
  0xda   :  { %v728_v43 = vpop.eup %727  ;;  %v503_v44 = vmul.f32 1.442695, %v463_v10  ;;  %v416_v45 = vmul.f32 %v389_v36, %v389_v36  ;;  %v417_v53 = vmul.f32 %v390_v27, %v390_v27  ;;  %v394_v2 = vsub.f32 %v356_v34, %v937_v47 }
  0xdb   :  { %v730_v49 = vpop.eup %729  ;;  %v539_v41 = vadd.f32 %v728_v43, %v1000_v20  ;;  %v565_v58 = vmul.f32 %v728_v43, %v1000_v20  ;;  %v505_v54 = vmul.f32 1.442695, %v464_v14  ;;  %v414_v55 = vmul.f32 %v387_v37, %v387_v37 }
  0xdc   :  { %v540_v28 = vadd.f32 %v730_v49, %v1004_v24  ;;  %v566_v19 = vmul.f32 %v730_v49, %v1004_v24  ;;  %739 = vpow2.f32 %v503_v44  ;;  %v443_v30 = vmul.f32 %v977_v38, %v416_v45 }
  0xdd   :  { %591 = vst [vmem:[%s1283_s3 + $0x60] sm:$0xff] %v539_v41  ;;  %617 = vst [vmem:[%s1284_s4 + $0x60] sm:$0xff] %v565_v58  ;;  %741 = vpow2.f32 %v505_v54  ;;  %v444_v20 = vmul.f32 %v977_v38, %v417_v53  ;;  %v415_v40 = vmul.f32 %v388_v42, %v388_v42  ;;  %v441_v62 = vmul.f32 %v977_v38, %v414_v55 }
  0xde   :  { %v732_v60 = vpop.eup %731  ;;  %592 = vst [vmem:[%s1283_s3 + $0x68] sm:$0xff] %v540_v28  ;;  %618 = vst [vmem:[%s1284_s4 + $0x68] sm:$0xff] %v566_v19  ;;  %v469_v24 = vmul.f32 -0.5, %v443_v30  ;;  %v420_v4 = vmul.f32 %v393_v46, %v393_v46  ;;  %v391_v5 = vsub.f32 %v351_v56, %v910_v48  ;;  %v392_v22 = vsub.f32 %v351_v56, %v937_v47 }
  0xdf   :  { %v734_v7 = vpop.eup %733  ;;  %v537_v23 = vadd.f32 %v732_v60, %v973_v35  ;;  %v563_v1 = vmul.f32 %v732_v60, %v973_v35  ;;  %v470_v8 = vmul.f32 -0.5, %v444_v20  ;;  %v442_v32 = vmul.f32 %v977_v38, %v415_v40 }
  0xe0   :  { %v538_v12 = vadd.f32 %v734_v7, %v981_v52  ;;  %v564_v59 = vmul.f32 %v734_v7, %v981_v52  ;;  %v515_v13 = vmul.f32 1.442695, %v469_v24  ;;  %v467_v15 = vmul.f32 -0.5, %v441_v62 }
  0xe1   :  { %589 = vst [vmem:[%s1283_s3 + $0x50] sm:$0xff] %v537_v23  ;;  %615 = vst [vmem:[%s1284_s4 + $0x50] sm:$0xff] %v563_v1  ;;  %v517_v48 = vmul.f32 1.442695, %v470_v8  ;;  %v468_v16 = vmul.f32 -0.5, %v442_v32  ;;  %v421_v35 = vmul.f32 %v394_v2, %v394_v2  ;;  %v447_v18 = vmul.f32 %v977_v38, %v420_v4  ;;  %v736_v21 = vpop.eup %735 }
  0xe2   :  { %590 = vst [vmem:[%s1283_s3 + $0x58] sm:$0xff] %v538_v12  ;;  %616 = vst [vmem:[%s1284_s4 + $0x58] sm:$0xff] %v564_v59  ;;  %743 = vpow2.f32 %v515_v13  ;;  %v511_v52 = vmul.f32 1.442695, %v467_v15  ;;  %v418_v33 = vmul.f32 %v391_v5, %v391_v5  ;;  %v738_v63 = vpop.eup %737  ;;  %v543_v25 = vadd.f32 %v736_v21, %v1022_v61 }
  0xe3   :  { %v569_v26 = vmul.f32 %v736_v21, %v1022_v61  ;;  %745 = vpow2.f32 %v517_v48  ;;  %v513_v31 = vmul.f32 1.442695, %v468_v16  ;;  %v544_v34 = vadd.f32 %v738_v63, %v1025_v3 }
  0xe4   :  { %v570_v10 = vmul.f32 %v738_v63, %v1025_v3  ;;  %747 = vpow2.f32 %v511_v52  ;;  %v448_v36 = vmul.f32 %v977_v38, %v421_v35  ;;  %595 = vst [vmem:[%s1283_s3 + $0x80] sm:$0xff] %v543_v25  ;;  %v473_v47 = vmul.f32 -0.5, %v447_v18 }
  0xe5   :  { %621 = vst [vmem:[%s1284_s4 + $0x80] sm:$0xff] %v569_v26  ;;  %749 = vpow2.f32 %v513_v31  ;;  %v419_v61 = vmul.f32 %v392_v22, %v392_v22  ;;  %v445_v27 = vmul.f32 %v977_v38, %v418_v33  ;;  %v271_v37 = vmul.f32 1.442695, %v1015_v51  ;;  %596 = vst [vmem:[%s1283_s3 + $0x88] sm:$0xff] %v544_v34 }
  0xe6   :  { %v740_v14 = vpop.eup %739  ;;  %751 = vpow2.f32 %v1019_v57  ;;  %622 = vst [vmem:[%s1284_s4 + $0x88] sm:$0xff] %v570_v10  ;;  %v474_v3 = vmul.f32 -0.5, %v448_v36  ;;  %v523_v45 = vmul.f32 1.442695, %v473_v47 }
  0xe7   :  { %v742_v42 = vpop.eup %741  ;;  %v541_v43 = vadd.f32 %v740_v14, %v993_v6  ;;  %v567_v44 = vmul.f32 %v740_v14, %v993_v6  ;;  %v446_v53 = vmul.f32 %v977_v38, %v419_v61  ;;  %v471_v49 = vmul.f32 -0.5, %v445_v27 }
  0xe8   :  { %v542_v51 = vadd.f32 %v742_v42, %v997_v11  ;;  %v568_v57 = vmul.f32 %v742_v42, %v997_v11  ;;  %v525_v46 = vmul.f32 1.442695, %v474_v3  ;;  %753 = vpow2.f32 %v523_v45 }
  0xe9   :  { %593 = vst [vmem:[%s1283_s3 + $0x70] sm:$0xff] %v541_v43  ;;  %619 = vst [vmem:[%s1284_s4 + $0x70] sm:$0xff] %v567_v44  ;;  %v472_v41 = vmul.f32 -0.5, %v446_v53  ;;  %v519_v38 = vmul.f32 1.442695, %v471_v49 }
  0xea   :  { %594 = vst [vmem:[%s1283_s3 + $0x78] sm:$0xff] %v542_v51  ;;  %620 = vst [vmem:[%s1284_s4 + $0x78] sm:$0xff] %v568_v57  ;;  %755 = vpow2.f32 %v525_v46 }
  0xeb   :  { %757 = vpow2.f32 %v271_v37  ;;  %v521_v6 = vmul.f32 1.442695, %v472_v41 }
  0xec   :  { %v744_v11 = vpop.eup %743  ;;  %759 = vpow2.f32 %v519_v38 }
  0xed   :  { %v746_v58 = vpop.eup %745  ;;  %v547_v54 = vadd.f32 %v744_v11, %v1033_v17  ;;  %v573_v55 = vmul.f32 %v744_v11, %v1033_v17  ;;  %761 = vpow2.f32 %v521_v6 }
  0xee   :  { %v748_v56 = vpop.eup %747  ;;  %v548_v28 = vadd.f32 %v746_v58, %v1036_v29  ;;  %v574_v19 = vmul.f32 %v746_v58, %v1036_v29 }
  0xef   :  { %v750_v30 = vpop.eup %749  ;;  %599 = vst [vmem:[%s1283_s3 + $0xa0] sm:$0xff] %v547_v54  ;;  %625 = vst [vmem:[%s1284_s4 + $0xa0] sm:$0xff] %v573_v55  ;;  %v545_v20 = vadd.f32 %v748_v56, %v1009_v39  ;;  %v571_v40 = vmul.f32 %v748_v56, %v1009_v39 }
  0xf0   :  { %v752_v17 = vpop.eup %751  ;;  %600 = vst [vmem:[%s1283_s3 + $0xa8] sm:$0xff] %v548_v28  ;;  %626 = vst [vmem:[%s1284_s4 + $0xa8] sm:$0xff] %v574_v19  ;;  %v546_v29 = vadd.f32 %v750_v30, %v1013_v50  ;;  %v572_v62 = vmul.f32 %v750_v30, %v1013_v50 }
  0xf1   :  { %597 = vst [vmem:[%s1283_s3 + $0x90] sm:$0xff] %v545_v20  ;;  %623 = vst [vmem:[%s1284_s4 + $0x90] sm:$0xff] %v571_v40 }
  0xf2   :  { %598 = vst [vmem:[%s1283_s3 + $0x98] sm:$0xff] %v546_v29  ;;  %624 = vst [vmem:[%s1284_s4 + $0x98] sm:$0xff] %v572_v62  ;;  %v754_v39 = vpop.eup %753 }
  0xf3   :  { %v551_v50 = vadd.f32 %v754_v39, %v1052_v0  ;;  %v577_v24 = vmul.f32 %v754_v39, %v1052_v0 }
  0xf4   :  { %v756_v60 = vpop.eup %755 }
  0xf5   :  { %v758_v2 = vpop.eup %757  ;;  %v552_v4 = vadd.f32 %v756_v60, %v752_v17  ;;  %v578_v5 = vmul.f32 %v756_v60, %v752_v17  ;;  %603 = vst [vmem:[%s1283_s3 + $0xc0] sm:$0xff] %v551_v50  ;;  %629 = vst [vmem:[%s1284_s4 + $0xc0] sm:$0xff] %v577_v24 }
  0xf6   :  { %v760_v7 = vpop.eup %759 }
  0xf7   :  { %v762_v23 = vpop.eup %761  ;;  %604 = vst [vmem:[%s1283_s3 + $0xc8] sm:$0xff] %v552_v4  ;;  %630 = vst [vmem:[%s1284_s4 + $0xc8] sm:$0xff] %v578_v5  ;;  %v549_v0 = vadd.f32 %v760_v7, %v1029_v9  ;;  %v575_v1 = vmul.f32 %v760_v7, %v1029_v9 }
  0xf8   :  { %v550_v8 = vadd.f32 %v762_v23, %v758_v2  ;;  %v576_v32 = vmul.f32 %v762_v23, %v758_v2 }
  0xf9   :  { %601 = vst [vmem:[%s1283_s3 + $0xb0] sm:$0xff] %v549_v0  ;;  %627 = vst [vmem:[%s1284_s4 + $0xb0] sm:$0xff] %v575_v1 }
  0xfa   :  { %602 = vst [vmem:[%s1283_s3 + $0xb8] sm:$0xff] %v550_v8  ;;  %628 = vst [vmem:[%s1284_s4 + $0xb8] sm:$0xff] %v576_v32 }
  0xfb   :  { %639 = vsyncpa [#allocation3], 1 }

</bundles_post_ra>
